<compile_context>
chip_gen: v7x
topology: tpu7x:2x2x1
jax: 0.10.0
libtpu: 0.0.40
codegen_flags: <defaults>
</compile_context>

<pallas_src>
import functools

import jax
import jax.numpy as jnp
from jax import lax
from jax.experimental import pallas as pl
from jax.experimental.pallas import tpu as pltpu


def _round_up(x, m):
    return ((x + m - 1) // m) * m


def _round_down(x, m):
    return (x // m) * m


def _layernorm_kernel(x_ref, gb_ref, o_ref, *, eps, n_valid):
    # x_ref: (tile_rows, Cp) block; gb_ref: (2, Cp) with gamma in row 0, beta
    # in row 1.  If lanes were padded, they are zero, so they contribute
    # nothing to either sum; statistics divide by the real channel count.
    x = x_ref[...].astype(jnp.float32)
    inv_n = 1.0 / float(n_valid)

    s1 = jnp.sum(x, axis=-1, keepdims=True)
    s2 = jnp.sum(x * x, axis=-1, keepdims=True)
    mean = s1 * inv_n
    # PyTorch LayerNorm uses the biased variance (divide by N).  Single-pass
    # form can go slightly negative from rounding -> clamp at 0.
    var = jnp.maximum(s2 * inv_n - mean * mean, 0.0)
    inv = lax.rsqrt(var + eps)

    g = gb_ref[0:1, :].astype(jnp.float32)
    b = gb_ref[1:2, :].astype(jnp.float32)
    o_ref[...] = ((x - mean) * inv * g + b).astype(o_ref.dtype)


def layer_norm_pallas(x, gamma, beta, *, eps=1e-5):
    """LayerNorm over the last dim of x (any leading dims), with affine params.

    x:     (..., C)
    gamma: (C,)  beta: (C,)
    """
    orig_shape = x.shape
    C = orig_shape[-1]
    R = 1
    for d in orig_shape[:-1]:
        R *= d
    x2d = x.reshape(R, C)

    itemsize = jnp.dtype(x.dtype).itemsize
    # Sublane packing: 8 rows for 32-bit, 16 for bf16, 32 for 8-bit dtypes.
    sub = max(8, 32 // max(itemsize, 1))

    # Generation-aware sizing (v7x has 64 MiB VMEM per TC; v5e/v6e have 128).
    try:
        vmem_cap = int(pltpu.get_tpu_info().vmem_capacity_bytes)
    except Exception:
        vmem_cap = 64 * 1024 * 1024  # conservative fallback
    if vmem_cap <= 80 * 1024 * 1024:
        target_block_bytes = 3 * 1024 * 1024
        vmem_ceiling = 40 * 1024 * 1024
    else:
        target_block_bytes = 6 * 1024 * 1024
        vmem_ceiling = 96 * 1024 * 1024

    # Channel layout: keep the native extent whenever possible (no host pad,
    # no output slice).  Pad to a 128 multiple only for small non-aligned C,
    # where masked partial stores would dominate the kernel.
    pad_lanes = (C % 128 != 0) and (C < 512)
    Cp = _round_up(C, 128) if pad_lanes else C

    # Row tile from the VMEM budget; cap so the grid keeps >= ~4 steps
    # (pipelining stays on and both v7x TensorCores get work).
    bytes_per_row = Cp * itemsize
    tile_rows = _round_down(max(target_block_bytes // bytes_per_row, sub), sub)
    min_steps = 4
    cap = max(_round_down(pl.cdiv(R, min_steps), sub), sub)
    tile_rows = max(min(tile_rows, cap), sub)
    # TODO(synk): add a channel-split (two-level) path for very large C where
    # even an 8-row block plus its f32 temps would not fit v7x's 64 MiB VMEM.

    if pad_lanes:
        # Zero padding keeps the in-kernel sums exact for the real channels.
        x2d = jnp.pad(x2d, ((0, 0), (0, Cp - C)))

    g = jnp.asarray(gamma, jnp.float32).reshape(-1)
    b = jnp.asarray(beta, jnp.float32).reshape(-1)
    if Cp != C:
        g = jnp.pad(g, (0, Cp - C), constant_values=1.0)
        b = jnp.pad(b, (0, Cp - C), constant_values=0.0)
    gb = jnp.stack([g, b], axis=0)  # (2, Cp) fused gamma/beta

    grid = (pl.cdiv(R, tile_rows),)

    # VMEM: double-buffered in/out blocks + f32 temps inside the kernel body
    # (upcast x + output temp), plus the small gb block; add headroom.
    block_bytes = tile_rows * Cp * itemsize
    temps_f32 = 2 * tile_rows * Cp * 4
    need = 4 * block_bytes + temps_f32 + 4 * Cp * 4 + (1 << 20)
    vmem_limit = int(min(max(2 * need, 16 * 1024 * 1024), vmem_ceiling))

    kernel = functools.partial(_layernorm_kernel, eps=float(eps), n_valid=C)

    out2d = pl.pallas_call(
        kernel,
        out_shape=jax.ShapeDtypeStruct((R, Cp), x.dtype),
        grid_spec=pltpu.PrefetchScalarGridSpec(
            num_scalar_prefetch=0,
            grid=grid,
            in_specs=[
                pl.BlockSpec((tile_rows, Cp), lambda i: (i, 0)),
                pl.BlockSpec((2, Cp), lambda i: (0, 0)),
            ],
            out_specs=pl.BlockSpec((tile_rows, Cp), lambda i: (i, 0)),
        ),
        compiler_params=pltpu.CompilerParams(
            dimension_semantics=("parallel",),
            vmem_limit_bytes=vmem_limit,
        ),
    )(x2d, gb)

    if Cp != C:
        out2d = out2d[:, :C]
    return out2d.reshape(orig_shape)


class LayerNorm:
    """JAX/Pallas equivalent of the PyTorch module.

    Parameters (gamma=ones, beta=zeros) are initialized deterministically,
    matching torch.nn.LayerNorm's default init.
    """

    def __init__(self, input_size=None, input_shape=None, eps=1e-5,
                 elementwise_affine=True):
        self.eps = eps
        self.elementwise_affine = elementwise_affine
        if input_shape is not None:
            input_size = input_shape[2:]
        if isinstance(input_size, int):
            norm_shape = (input_size,)
        else:
            norm_shape = tuple(input_size)
        self.norm_shape = norm_shape
        n = 1
        for d in norm_shape:
            n *= d
        self._n = n
        # With elementwise_affine=False torch has no params; gamma=1/beta=0
        # gives the identical numerical result.
        self.gamma = jnp.ones((n,), dtype=jnp.float32)
        self.beta = jnp.zeros((n,), dtype=jnp.float32)

    def __call__(self, x):
        # Normalize over the trailing len(norm_shape) dims (flattened).
        k = len(self.norm_shape)
        lead = x.shape[: x.ndim - k]
        x_flat = x.reshape(lead + (self._n,))
        y = layer_norm_pallas(x_flat, self.gamma, self.beta, eps=self.eps)
        return y.reshape(x.shape)


if __name__ == "__main__":
    key = jax.random.PRNGKey(0)
    kx, kg, kb, kx2 = jax.random.split(key, 4)

    def ref_ln(xf, eps=1e-5):
        m = jnp.mean(xf, axis=-1, keepdims=True)
        v = jnp.mean((xf - m) ** 2, axis=-1, keepdims=True)
        return (xf - m) / jnp.sqrt(v + eps)

    # Case 1: small non-128-aligned channels (pad-to-128 path), (B, T, C).
    B, T, C = 2, 8, 32
    x = jax.random.normal(kx, (B, T, C), dtype=jnp.float32)
    norm = LayerNorm(input_shape=(B, T, C))
    out = jax.block_until_ready(norm(x))
    assert out.shape == x.shape
    assert jnp.max(jnp.abs(out - ref_ln(x))) < 1e-4

    # Affine path check (random gamma/beta).
    gamma = jax.random.normal(kg, (C,), dtype=jnp.float32)
    beta = jax.random.normal(kb, (C,), dtype=jnp.float32)
    out_aff = jax.block_until_ready(layer_norm_pallas(x, gamma, beta, eps=1e-5))
    assert jnp.max(jnp.abs(out_aff - (ref_ln(x) * gamma + beta))) < 1e-4

    # Case 2: 128-aligned channels -> no pad / no slice, lane-dense stores.
    B2, T2, C2 = 2, 64, 128
    x2 = jax.random.normal(kx2, (B2, T2, C2), dtype=jnp.float32)
    norm2 = LayerNorm(input_shape=(B2, T2, C2))
    out2 = jax.block_until_ready(norm2(x2))
    assert jnp.max(jnp.abs(out2 - ref_ln(x2))) < 1e-4

    # Case 3: bf16 pass-through (16-row sublane tiles, f32 math inside).
    x3 = x2.astype(jnp.bfloat16)
    out3 = jax.block_until_ready(norm2(x3))
    assert out3.dtype == jnp.bfloat16
    assert jnp.max(jnp.abs(out3.astype(jnp.float32)
                           - ref_ln(x3.astype(jnp.float32)))) < 3e-2

    print("KERNEL_OK")
</pallas_src>

<mosaic_0001>
module attributes {stable_mosaic.version = 11 : i64} {
  func.func @_layernorm_kernel(%arg0: i32, %arg1: memref<8x128xf32, #tpu.memory_space<vmem>>, %arg2: memref<2x128xf32, #tpu.memory_space<vmem>>, %arg3: memref<8x128xf32, #tpu.memory_space<vmem>>) attributes {dimension_semantics = [#tpu.dimension_semantics<parallel>], iteration_bounds = array<i64: 2>, scalar_prefetch = 0 : i64, scratch_operands = 0 : i64, tpu.core_type = #tpu.core_type<tc>, window_params = [{transform_indices = @transform_0, window_bounds = array<i64: 8, 128>}, {pipeline_mode = #tpu.pipeline_mode<synchronous>, transform_indices = @transform_1, window_bounds = array<i64: 2, 128>}, {transform_indices = @transform_2, window_bounds = array<i64: 8, 128>}]} {
    %c0 = arith.constant 0 : index
    %c0_0 = arith.constant 0 : index
    %0 = vector.load %arg1[%c0, %c0_0] : memref<8x128xf32, #tpu.memory_space<vmem>>, vector<8x128xf32>
    %cst = arith.constant dense<0.000000e+00> : vector<8xf32>
    %1 = vector.multi_reduction <add>, %0, %cst [1] : vector<8x128xf32> to vector<8xf32>
    %2 = vector.shape_cast %1 : vector<8xf32> to vector<8x1xf32>
    %3 = arith.mulf %0, %0 : vector<8x128xf32>
    %cst_1 = arith.constant dense<0.000000e+00> : vector<8xf32>
    %4 = vector.multi_reduction <add>, %3, %cst_1 [1] : vector<8x128xf32> to vector<8xf32>
    %5 = vector.shape_cast %4 : vector<8xf32> to vector<8x1xf32>
    %cst_2 = arith.constant 3.125000e-02 : f32
    %6 = vector.broadcast %cst_2 : f32 to vector<8x1xf32>
    %7 = arith.mulf %2, %6 : vector<8x1xf32>
    %cst_3 = arith.constant 3.125000e-02 : f32
    %8 = vector.broadcast %cst_3 : f32 to vector<8x1xf32>
    %9 = arith.mulf %5, %8 : vector<8x1xf32>
    %10 = arith.mulf %7, %7 : vector<8x1xf32>
    %11 = arith.subf %9, %10 : vector<8x1xf32>
    %cst_4 = arith.constant 0.000000e+00 : f32
    %12 = vector.broadcast %cst_4 : f32 to vector<8x1xf32>
    %13 = arith.maximumf %11, %12 : vector<8x1xf32>
    %cst_5 = arith.constant 9.99999974E-6 : f32
    %14 = vector.broadcast %cst_5 : f32 to vector<8x1xf32>
    %15 = arith.addf %13, %14 : vector<8x1xf32>
    %16 = math.rsqrt %15 : vector<8x1xf32>
    %c0_6 = arith.constant 0 : index
    %c0_7 = arith.constant 0 : index
    %17 = vector.load %arg2[%c0_6, %c0_7] : memref<2x128xf32, #tpu.memory_space<vmem>>, vector<1x128xf32>
    %c1 = arith.constant 1 : index
    %c0_8 = arith.constant 0 : index
    %18 = vector.load %arg2[%c1, %c0_8] : memref<2x128xf32, #tpu.memory_space<vmem>>, vector<1x128xf32>
    %19 = vector.broadcast %7 : vector<8x1xf32> to vector<8x128xf32>
    %20 = arith.subf %0, %19 : vector<8x128xf32>
    %21 = vector.broadcast %16 : vector<8x1xf32> to vector<8x128xf32>
    %22 = arith.mulf %20, %21 : vector<8x128xf32>
    %23 = vector.broadcast %17 : vector<1x128xf32> to vector<8x128xf32>
    %24 = arith.mulf %22, %23 : vector<8x128xf32>
    %25 = vector.broadcast %18 : vector<1x128xf32> to vector<8x128xf32>
    %26 = arith.addf %24, %25 : vector<8x128xf32>
    %c0_9 = arith.constant 0 : index
    %c0_10 = arith.constant 0 : index
    %27 = vector.load %arg3[%c0_9, %c0_10] : memref<8x128xf32, #tpu.memory_space<vmem>>, vector<8x128xf32>
    tpu.vector_store %arg3[%c0_9, %c0_10], %26 {strides = array<i32>} : memref<8x128xf32, #tpu.memory_space<vmem>>, vector<8x128xf32>,
    return
  }
  func.func @transform_0(%arg0: i32) -> (i32, i32) {
    %c0_i32 = arith.constant 0 : i32
    %c0_i32_0 = arith.constant 0 : i32
    return %arg0, %c0_i32 : i32, i32
  }
  func.func @transform_1(%arg0: i32) -> (i32, i32) {
    %c0_i32 = arith.constant 0 : i32
    %c0_i32_0 = arith.constant 0 : i32
    %c0_i32_1 = arith.constant 0 : i32
    return %c0_i32, %c0_i32_0 : i32, i32
  }
  func.func @transform_2(%arg0: i32) -> (i32, i32) {
    %c0_i32 = arith.constant 0 : i32
    %c0_i32_0 = arith.constant 0 : i32
    return %arg0, %c0_i32 : i32, i32
  }
}

</mosaic_0001>

<bundles_post_ra>
// kernel: tpu_custom_call.1
= control target key start
LH: loop header
LB: loop body
LE: loop exit
PB: predicated region body
PF: predicated region fallthrough
CT: control target
= control target key end

     0   :  { %7 = vsyncpa [#allocation3], 0  ;;  %s615_s0 = inlined_call_operand.hbm [shape: f32[16,128], index: 0, kind: input, shape index: {}]   ;;  %s616_s1 = inlined_call_operand.vmem [shape: f32[2,128], index: 1, kind: input, shape index: {}]   ;;  %s617_s2 = inlined_call_operand.hbm [shape: f32[16,128], index: 2, kind: output, shape index: {}]  }
   0x1   :  { %9 = vsyncpa [#allocation3 + $0x1], 0 }
   0x2   :  { %10 = vsyncpa [#allocation4], 0 }
   0x3   :  { %12 = vsyncpa [#allocation4 + $0x1], 0  ;;  %s448_s9 = smov 0   ;;  %s450_s10 = smov 0  }
   0x4   :  { %s452_s11 = smov 0   ;;  %s454_s12 = smov 0  }
   0x5 LB: > { %s469_s13 = sadd.s32 4294967295, %s429_s12   ;;  %s271_s14 = sadd.s32 4294967294, %s429_s12   ;;  %s429_s12 = sphi %s454_s12, %s632_s12   ;;  %s425_s11 = sphi %s452_s11, %s631_s11   ;;  %s421_s10 = sphi %s450_s10, %s630_s10   ;;  %s417_s9 = sphi %s448_s9, %s629_s9  }
   0x6   : > { %s473_s15 = sadd.s32 1, %s429_s12   ;;  %s25_s16 = sadd.s32 1, %s425_s11 }
   0x7   : > { %s22_s17 = ssub.s32 %s429_s12, %s473_s15  ;;  %p32_p0 = scmp.ne.s32.totalorder %s425_s11, %s421_s10 }
   0x8   : > { %p23_p1 = scmp.eq.s32.totalorder %s22_s17, 0  ;;  %p33_p2 = scmp.eq.s32.totalorder %s429_s12, 0 }
   0x9   : > { %p38_p3 = scmp.ne.s32.totalorder %s421_s10, %s417_s9  ;;  %p39_p4 = scmp.eq.s32.totalorder %s469_s13, 0 }
   0xa   : > { %s485_s18 = scalar_select %p23_p1, %s425_s11, %s25_s16  }
   0xb   : > { %p487_p5 = por %p33_p2, %p32_p0  ;;  %p491_p6 = por %p39_p4, %p38_p3 }
   0xc   : > { %p83_p7 = scmp.eq.s32.totalorder %s469_s13, 1  ;;  %p89_p8 = scmp.eq.s32.totalorder %s271_s14, 1 }
   0xd   : > { %p297_p10 = scmp.lt.s32.totalorder %s429_s12, 2  ;;  %s112_s23 = sand.u32 1, %s425_s11  }
   0xe   : > { %p498_p11 = por %p83_p7, %p32_p0  ;;  %p502_p12 = por %p89_p8, %p38_p3 }
   0xf   : > { %s275_s24 = sshll.u32 %s429_s12, 7  ;;  %s274_s25 = sshll.u32 %s112_s23, 3 }
  0x10   : > { %s621_s21 = scalar_select %p498_p11, 1, 0 }
  0x11   : > { %s622_s22 = scalar_select %p502_p12, 1, 0 }
  0x12   : > { %s511_s28 = scalar_lea.hbm %s615_s0, %s275_s24  ;;  %s116_s29 = scalar_lea.vmem [#allocation2], %s274_s25 }
  0x13   : > { %s123_s30 = sshll.u32 %s116_s29, 4  ;;  %p515_p13 = pnand %p297_p10, %p487_p5  ;;  %s519_s30 = int_to_ptr.vmem [resolvable:$true] %s123_s30 }
  0x14   : > { %s113_s4 = scalar_lea.sflag [#allocation3], %s112_s23  ;;  %s333_s5 = scalar_lea.hbm %s511_s28, 128 }
  0x15   : > { %p334_p2 = scmp.ne.s32.totalorder %s511_s28, %s333_s5  ;;  %p335_p3 = pneg %p515_p13 }
  0x16   : > { %s338_s8 = scalar_lea.hbm %s615_s0, 256  ;;  %p339_p5 = scmp.lt.u32.totalorder %s511_s28, %s615_s0 }
  0x17   : > { %p336_p4 = pnand %p335_p3, %p334_p2  ;;  %p340_p8 = scmp.lt.u32.totalorder %s338_s8, %s333_s5 }
  0x18   : > { %p342_p9 = scmp.lt.u32.totalorder %s333_s5, %s511_s28 }
  0x19   : > { %p337_p7 = pneg %p336_p4  ;;  %p341_p10 = por %p340_p8, %p339_p5 }
  0x1b   : > { %p343_p0 = por %p342_p9, %p341_p10 }
  0x1d   : > { %p344_p1 = pnand %p343_p0, %p337_p7 }
  0x1f   : > { %347 = shalt.err (!%p344_p1)
}
  0x20   : > { %s348_s17 = scalar_lea.vmem %s519_s30, 128  ;;  %s431_s19 = smov [#allocation2]  }
  0x21   : > { %p349_p2 = scmp.ne.s32.totalorder %s519_s30, %s348_s17  ;;  %s353_s23 = sshll.u32 %s431_s19, 4  ;;  %s354_s23 = int_to_ptr.vmem [resolvable:$false] %s353_s23 }
  0x22   : > { %s355_s24 = scalar_lea.vmem %s354_s23, 256  ;;  %p356_p11 = scmp.lt.s32.totalorder %s519_s30, %s354_s23 }
  0x23   : > { %p351_p4 = pnand %p349_p2, %p335_p3  ;;  %p357_p5 = scmp.lt.s32.totalorder %s355_s24, %s348_s17 }
  0x25   : > { %p352_p12 = pneg %p351_p4  ;;  %p358_p8 = por %p357_p5, %p356_p11 }
  0x27   : > { %p359_p9 = pnand %p358_p8, %p352_p12 }
  0x29   : > { %362 = shalt.err (!%p359_p9)
}
  0x2a   : > { %292 = dma.hbm_to_vmem [thread:$0]  (!%p515_p13), %s511_s28, 128, %s519_s30, %s113_s4  }
  0x2b   : > { %p624_p0 = scmp.lt.s32.totalorder %s429_s12, 3  ;;  %p625_p1 = scmp.ge.s32.totalorder %s429_s12, 1 }
  0x2d   : > { %p129_p3 = pnand %p625_p1, %p624_p0 }
  0x2e   : > { %s553_s25 = sand.u32 (!%p129_p3), 1, %s421_s10  }
  0x2f   : > { %132 = sbr.rel (%p129_p3) target bundleno = 241 (0xf1), region = 28  ;;  %s277_s26 = sshll.u32 (!%p129_p3), %s553_s25, 3 }
  0x30   : > { %s135_s27 = scalar_lea.sflag (!%p129_p3), [#allocation3], %s553_s25  ;;  %s138_s29 = scalar_lea.vmem (!%p129_p3), [#allocation2], %s277_s26 }
  0x36   : > { %408 = dma.done.wait (%p491_p6), %s135_s27, 128  }
  0x37   : > { %410 = vsyncadd (%p491_p6), %s135_s27, 4294967168  ;;  %v159_v0 = vld [vmem:[%s138_s29] sm:$0xff]  ;;  %s282_s4 = sshll.u32 %s469_s13, 7  ;;  %s158_s5 = scalar_lea.vmem [#allocation5], %s277_s26 }
  0x38   : > { %160 = vadd.xlane.f32.xlu0 %v159_v0  ;;  %v162_v1 = vmul.f32 %v159_v0, %v159_v0  ;;  %v279_v12 = vld [vmem:[%s616_s1] ss:$0 sm:$0xff]  ;;  %v280_v14 = vld [vmem:[%s616_s1 + $0x1] ss:$0 sm:$0xff]  ;;  %s201_s6 = sshll.u32 %s158_s5, 4  ;;  %s571_s14 = scalar_lea.hbm %s617_s2, %s282_s4  ;;  %s573_s6 = int_to_ptr.vmem [resolvable:$true] %s201_s6 }
  0x39   : > { %s188_s16 = scalar_lea.sflag [#allocation4], %s553_s25  ;;  %s363_s17 = scalar_lea.vmem %s573_s6, 128 }
  0x3a   : > { %p364_p6 = scmp.ne.s32.totalorder %s573_s6, %s363_s17  ;;  %p626_p11 = scmp.ne.s32.totalorder %s621_s21, 0 }
  0x3b   : > { %s432_s13 = smov [#allocation5]  }
  0x3c   : > { %163 = vadd.xlane.f32.xlu0 %v162_v1  ;;  %p365_p12 = pnand %p364_p6, %p626_p11  ;;  %s367_s19 = sshll.u32 %s432_s13, 4  ;;  %s368_s19 = int_to_ptr.vmem [resolvable:$false] %s367_s19 }
  0x3d   : > { %s369_s23 = scalar_lea.vmem %s368_s19, 256  ;;  %p370_p7 = scmp.lt.s32.totalorder %s573_s6, %s368_s19 }
  0x3e   : > { %p366_p13 = pneg %p365_p12  ;;  %p371_p10 = scmp.lt.s32.totalorder %s369_s23, %s363_s17 }
  0x40   : > { %p372_p2 = por %p371_p10, %p370_p7 }
  0x42   : > { %p373_p4 = pnand %p372_p2, %p366_p13 }
  0xc5   : > { %v161_v2 = vpop.xlane.xlu0 %160 }
  0xc6   : > { %v165_v3 = vmul.f32 0.03125, %v161_v2 }
  0xc8   : > { %v167_v5 = vmul.f32 %v165_v3, %v165_v3  ;;  %v174_v10 = vsub.f32 %v159_v0, %v165_v3 }
  0xc9   : > { %v164_v4 = vpop.xlane.xlu0 %163 }
  0xca   : > { %v166_v6 = vmul.f32 0.03125, %v164_v4 }
  0xcc   : > { %v168_v7 = vsub.f32 %v166_v6, %v167_v5 }
  0xce   : > { %v169_v8 = vmax.f32 %v168_v7, 0.0 }
  0xd0   : > { %v170_v9 = vadd.f32 1e-05, %v169_v8 }
  0xd2   : > { %331 = vrsqrt.f32 %v170_v9 }
  0xdc   : > { %v332_v11 = vpop.eup %331 }
  0xdd   : > { %v175_v13 = vmul.f32 %v332_v11, %v174_v10 }
  0xdf   : > { %v180_v15 = vmul.f32 %v279_v12, %v175_v13 }
  0xe1   : > { %v185_v16 = vadd.f32 %v280_v14, %v180_v15 }
  0xe3   : > { %186 = vst [vmem:[%s158_s5] sm:$0xff] %v185_v16 }
  0xe4   : > { %376 = shalt.err (!%p373_p4)
}
  0xe5   : > { %s377_s24 = scalar_lea.hbm %s571_s14, 128  ;;  %s381_s27 = scalar_lea.hbm %s617_s2, 256 }
  0xe6   : > { %p378_p5 = scmp.ne.s32.totalorder %s571_s14, %s377_s24  ;;  %p382_p0 = scmp.lt.u32.totalorder %s571_s14, %s617_s2 }
  0xe7   : > { %p383_p1 = scmp.lt.u32.totalorder %s381_s27, %s377_s24  ;;  %p385_p6 = scmp.lt.u32.totalorder %s377_s24, %s571_s14 }
  0xe8   : > { %p379_p8 = pnand %p378_p5, %p626_p11 }
  0xe9   : > { %p384_p3 = por %p383_p1, %p382_p0 }
  0xea   : > { %p380_p9 = pneg %p379_p8 }
  0xeb   : > { %p386_p12 = por %p385_p6, %p384_p3 }
  0xed   : > { %p387_p13 = pnand %p386_p12, %p380_p9 }
  0xef   : > { %390 = shalt.err (!%p387_p13)
}
  0xf0   : > { %287 = dma.vmem_to_hbm [thread:$0]  (%p626_p11), %s573_s6, 128, %s571_s14, %s188_s16  }
  0xf1 PF: > { %s213_s28 = sand.u32 1, %s417_s9   ;;  %p627_p7 = scmp.ne.s32.totalorder %s622_s22, 0 }
  0xf2   : > { %p628_p10 = scmp.ge.s32.totalorder %s429_s12, 2  ;;  %s214_s30 = scalar_lea.sflag [#allocation4], %s213_s28 }
  0xf4   : > { %p294_p2 = pnand %p628_p10, %p627_p7 }
  0xf6   : > { %412 = dma.done.wait (!%p294_p2), %s214_s30, 128  }
  0xf7   : > { %414 = vsyncadd (!%p294_p2), %s214_s30, 4294967168  ;;  %p15_p4 = scmp.ge.s32.totalorder %s473_s15, 4   ;;  %s629_s9 = smov %s421_s10 }
  0xf8   : > { %s630_s10 = smov %s425_s11  ;;  %s631_s11 = smov %s485_s18 }
  0xf9   : > { %s632_s12 = smov %s473_s15  ;;  %17 = sbr.rel (!%p15_p4) target bundleno = 5 (0x5), region = 73 }
 0x100   :  { %219 = vsyncpa [#allocation3], 1 }
 0x101   :  { %221 = vsyncpa [#allocation3 + $0x1], 1 }
 0x102   :  { %222 = vsyncpa [#allocation4], 1 }
 0x103   :  { %224 = vsyncpa [#allocation4 + $0x1], 1 }

</bundles_post_ra>
